<compile_context>
chip_gen: v5e
topology: v5e:2x2
jax: 0.10.0
libtpu: 0.0.40
codegen_flags: <defaults>
</compile_context>

<pallas_src>
import functools

import jax
import jax.numpy as jnp
from jax import lax
from jax.experimental import pallas as pl
from jax.experimental.pallas import tpu as pltpu


def _round_up(x, m):
    return ((x + m - 1) // m) * m


def _nfl_ael_kernel(pred_ref, lab_ref, out_ref, *,
                    alpha, beta, inv_a, n_total, tile_n):
    i = pl.program_id(0)

    logits = pred_ref[...].astype(jnp.float32)       # (C, TN): classes on sublanes
    labels = lab_ref[...]                            # (1, TN): batch on lanes

    # Numerically stable per-column softmax / log_softmax (class axis = sublanes).
    m = jnp.max(logits, axis=0, keepdims=True)       # (1, TN)
    shifted = logits - m
    ex = jnp.exp(shifted)
    sum_ex = jnp.sum(ex, axis=0, keepdims=True)      # (1, TN)
    inv_sum = pl.reciprocal(sum_ex)                  # exact 1/x (1e-5 tolerance)
    logp = shifted - jnp.log(sum_ex)                 # (C, TN) log_softmax
    p = ex * inv_sum                                 # (C, TN) softmax

    # NFL normalizer: sum_c sqrt(1 - p_c) * (-logp_c); clamp for fp safety.
    w = jnp.sqrt(jnp.maximum(1.0 - p, 0.0))
    normalizor = jnp.sum(w * (-logp), axis=0, keepdims=True)     # (1, TN)

    # Gather the true-class log-prob via a one-hot select over the class axis.
    onehot = lax.broadcasted_iota(jnp.int32, logits.shape, 0) == labels
    logpt = jnp.sum(jnp.where(onehot, logp, 0.0), axis=0, keepdims=True)  # (1, TN)
    pt = jnp.exp(logpt)

    nfl = jnp.sqrt(jnp.maximum(1.0 - pt, 0.0)) * (-logpt) * pl.reciprocal(normalizor)
    ael = jnp.exp(-pt * inv_a)
    per_col = alpha * nfl + beta * ael               # (1, TN)

    # Mask columns past the true batch size (partial edge block reads garbage;
    # the select keeps NaN/Inf from polluting the sum).
    col_ids = i * tile_n + lax.broadcasted_iota(jnp.int32, per_col.shape, 1)
    per_col = jnp.where(col_ids < n_total, per_col, 0.0)

    # Per-tile partial sum, splatted into the lane-dense output block.
    partial = jnp.sum(per_col, axis=1, keepdims=True)            # (1, 1)
    out_ref[...] = partial * jnp.ones((1, 1, 128), dtype=jnp.float32)


def nfl_and_ael_loss(pred, labels, *, num_classes=10, alpha=1.0, beta=1.0,
                     a=3.0, tile_n=16384):
    """pred: (N, C) float logits; labels: (N,) int. Returns scalar loss."""
    n, c = pred.shape
    assert c == num_classes

    tile_n = max(128, min(_round_up(int(tile_n), 128), _round_up(n, 128)))
    num_tiles = pl.cdiv(n, tile_n)

    # Layout plumbing only: batch on the 128-lane axis, classes on sublanes.
    pred_t = jnp.transpose(pred)                     # (C, N)
    labels_row = labels.astype(jnp.int32).reshape(1, n)

    kernel = functools.partial(
        _nfl_ael_kernel,
        alpha=float(alpha), beta=float(beta), inv_a=1.0 / float(a),
        n_total=int(n), tile_n=int(tile_n))

    partials = pl.pallas_call(
        kernel,
        out_shape=jax.ShapeDtypeStruct((num_tiles, 1, 128), jnp.float32),
        grid_spec=pltpu.PrefetchScalarGridSpec(
            num_scalar_prefetch=0,
            grid=(num_tiles,),
            in_specs=[
                pl.BlockSpec((c, tile_n), lambda i: (0, i)),
                pl.BlockSpec((1, tile_n), lambda i: (0, i)),
            ],
            out_specs=pl.BlockSpec((1, 1, 128), lambda i: (i, 0, 0)),
        ),
        compiler_params=pltpu.CompilerParams(
            dimension_semantics=("parallel",),
            vmem_limit_bytes=32 * 1024 * 1024),
    )(pred_t, labels_row)

    # Tiny final reduction over per-tile partials, plus the mean scaling.
    return jnp.sum(partials[:, 0, 0]) * (1.0 / float(n))


def _reference(pred, labels, *, num_classes=10, alpha=1.0, beta=1.0,
               a=3.0, gamma=0.5):
    logp = jax.nn.log_softmax(pred, axis=1)
    p = jnp.exp(logp)
    onehot = jax.nn.one_hot(labels, num_classes, dtype=jnp.float32)
    # NormalizedFocalLoss (scale=alpha, size_average=True)
    normalizor = jnp.sum(-(1.0 - p) ** gamma * logp, axis=1)
    logpt = jnp.sum(onehot * logp, axis=1)
    pt = jnp.exp(logpt)
    nfl = alpha * (-(1.0 - pt) ** gamma * logpt) / normalizor
    # AExpLoss (scale=beta)
    ael = beta * jnp.exp(-jnp.sum(onehot * p, axis=1) / a)
    return jnp.mean(nfl) + jnp.mean(ael)


if __name__ == "__main__":
    key = jax.random.PRNGKey(0)
    k1, k2 = jax.random.split(key)
    N, C = 16, 10                      # batch=16, num_classes=10
    pred = jax.random.normal(k1, (N, C), dtype=jnp.float32) * 2.0
    labels = jax.random.randint(k2, (N,), 0, C, dtype=jnp.int32)

    loss = nfl_and_ael_loss(pred, labels, num_classes=C, alpha=1.0, beta=1.0, a=3.0)
    loss = jax.block_until_ready(loss)

    ref = _reference(pred, labels, num_classes=C, alpha=1.0, beta=1.0, a=3.0)
    assert jnp.allclose(loss, ref, rtol=1e-5, atol=1e-5), (loss, ref)
    print("KERNEL_OK")
</pallas_src>

<mosaic_0001>
module attributes {stable_mosaic.version = 11 : i64} {
  func.func @_nfl_ael_kernel(%arg0: i32, %arg1: memref<10x128xf32, #tpu.memory_space<vmem>>, %arg2: memref<1x128xi32, #tpu.memory_space<vmem>>, %arg3: memref<1x1x128xf32, #tpu.memory_space<vmem>>) attributes {dimension_semantics = [#tpu.dimension_semantics<parallel>], iteration_bounds = array<i64: 1>, scalar_prefetch = 0 : i64, scratch_operands = 0 : i64, tpu.core_type = #tpu.core_type<tc>, window_params = [{transform_indices = @transform_0, window_bounds = array<i64: 10, 128>}, {transform_indices = @transform_1, window_bounds = array<i64: 1, 128>}, {transform_indices = @transform_2, window_bounds = array<i64: 1, 1, 128>}]} {
    %c0 = arith.constant 0 : index
    %c0_0 = arith.constant 0 : index
    %0 = vector.load %arg1[%c0, %c0_0] : memref<10x128xf32, #tpu.memory_space<vmem>>, vector<10x128xf32>
    %c0_1 = arith.constant 0 : index
    %c0_2 = arith.constant 0 : index
    %1 = vector.load %arg2[%c0_1, %c0_2] : memref<1x128xi32, #tpu.memory_space<vmem>>, vector<1x128xi32>
    %cst = arith.constant dense<0xFF800000> : vector<128xf32>
    %2 = vector.multi_reduction <maximumf>, %0, %cst [0] : vector<10x128xf32> to vector<128xf32>
    %3 = vector.shape_cast %2 : vector<128xf32> to vector<1x128xf32>
    %4 = vector.broadcast %3 : vector<1x128xf32> to vector<10x128xf32>
    %5 = arith.subf %0, %4 : vector<10x128xf32>
    %6 = math.exp %5 : vector<10x128xf32>
    %cst_3 = arith.constant dense<0.000000e+00> : vector<128xf32>
    %7 = vector.multi_reduction <add>, %6, %cst_3 [0] : vector<10x128xf32> to vector<128xf32>
    %8 = vector.shape_cast %7 : vector<128xf32> to vector<1x128xf32>
    %9 = tpu.reciprocal %8 : vector<1x128xf32> -> vector<1x128xf32>
    %10 = math.log %8 : vector<1x128xf32>
    %11 = vector.broadcast %10 : vector<1x128xf32> to vector<10x128xf32>
    %12 = arith.subf %5, %11 : vector<10x128xf32>
    %13 = vector.broadcast %9 : vector<1x128xf32> to vector<10x128xf32>
    %14 = arith.mulf %6, %13 : vector<10x128xf32>
    %cst_4 = arith.constant 1.000000e+00 : f32
    %15 = vector.broadcast %cst_4 : f32 to vector<10x128xf32>
    %16 = arith.subf %15, %14 : vector<10x128xf32>
    %cst_5 = arith.constant 0.000000e+00 : f32
    %17 = vector.broadcast %cst_5 : f32 to vector<10x128xf32>
    %18 = arith.maximumf %16, %17 : vector<10x128xf32>
    %19 = math.sqrt %18 : vector<10x128xf32>
    %cst_6 = arith.constant 0.000000e+00 : f32
    %20 = vector.broadcast %cst_6 : f32 to vector<10x128xf32>
    %21 = arith.subf %20, %12 : vector<10x128xf32>
    %22 = arith.mulf %19, %21 : vector<10x128xf32>
    %cst_7 = arith.constant dense<0.000000e+00> : vector<128xf32>
    %23 = vector.multi_reduction <add>, %22, %cst_7 [0] : vector<10x128xf32> to vector<128xf32>
    %24 = vector.shape_cast %23 : vector<128xf32> to vector<1x128xf32>
    %25 = tpu.iota {dimensions = array<i32: 0>} : vector<10x128xi32>
    %26 = vector.broadcast %1 : vector<1x128xi32> to vector<10x128xi32>
    %27 = arith.cmpi eq, %25, %26 : vector<10x128xi32>
    %cst_8 = arith.constant 0.000000e+00 : f32
    %28 = vector.broadcast %cst_8 : f32 to vector<10x128xf32>
    %29 = arith.select %27, %12, %28 : vector<10x128xi1>, vector<10x128xf32>
    %cst_9 = arith.constant dense<0.000000e+00> : vector<128xf32>
    %30 = vector.multi_reduction <add>, %29, %cst_9 [0] : vector<10x128xf32> to vector<128xf32>
    %31 = vector.shape_cast %30 : vector<128xf32> to vector<1x128xf32>
    %32 = math.exp %31 : vector<1x128xf32>
    %cst_10 = arith.constant 1.000000e+00 : f32
    %33 = vector.broadcast %cst_10 : f32 to vector<1x128xf32>
    %34 = arith.subf %33, %32 : vector<1x128xf32>
    %cst_11 = arith.constant 0.000000e+00 : f32
    %35 = vector.broadcast %cst_11 : f32 to vector<1x128xf32>
    %36 = arith.maximumf %34, %35 : vector<1x128xf32>
    %37 = math.sqrt %36 : vector<1x128xf32>
    %cst_12 = arith.constant 0.000000e+00 : f32
    %38 = vector.broadcast %cst_12 : f32 to vector<1x128xf32>
    %39 = arith.subf %38, %31 : vector<1x128xf32>
    %40 = arith.mulf %37, %39 : vector<1x128xf32>
    %41 = tpu.reciprocal %24 : vector<1x128xf32> -> vector<1x128xf32>
    %42 = arith.mulf %40, %41 : vector<1x128xf32>
    %cst_13 = arith.constant 0.000000e+00 : f32
    %43 = vector.broadcast %cst_13 : f32 to vector<1x128xf32>
    %44 = arith.subf %43, %32 : vector<1x128xf32>
    %cst_14 = arith.constant 0.333333343 : f32
    %45 = vector.broadcast %cst_14 : f32 to vector<1x128xf32>
    %46 = arith.mulf %44, %45 : vector<1x128xf32>
    %47 = math.exp %46 : vector<1x128xf32>
    %cst_15 = arith.constant 1.000000e+00 : f32
    %48 = vector.broadcast %cst_15 : f32 to vector<1x128xf32>
    %49 = arith.mulf %48, %42 : vector<1x128xf32>
    %cst_16 = arith.constant 1.000000e+00 : f32
    %50 = vector.broadcast %cst_16 : f32 to vector<1x128xf32>
    %51 = arith.mulf %50, %47 : vector<1x128xf32>
    %52 = arith.addf %49, %51 : vector<1x128xf32>
    %c128_i32 = arith.constant 128 : i32
    %53 = arith.muli %arg0, %c128_i32 : i32
    %54 = tpu.iota {dimensions = array<i32: 1>} : vector<1x128xi32>
    %55 = vector.broadcast %53 : i32 to vector<1x128xi32>
    %56 = arith.addi %55, %54 : vector<1x128xi32>
    %c16_i32 = arith.constant 16 : i32
    %57 = vector.broadcast %c16_i32 : i32 to vector<1x128xi32>
    %58 = arith.cmpi slt, %56, %57 : vector<1x128xi32>
    %cst_17 = arith.constant 0.000000e+00 : f32
    %59 = vector.broadcast %cst_17 : f32 to vector<1x128xf32>
    %60 = arith.select %58, %52, %59 : vector<1x128xi1>, vector<1x128xf32>
    %cst_18 = arith.constant dense<0.000000e+00> : vector<1xf32>
    %61 = vector.multi_reduction <add>, %60, %cst_18 [1] : vector<1x128xf32> to vector<1xf32>
    %62 = vector.shape_cast %61 : vector<1xf32> to vector<1x1xf32>
    %cst_19 = arith.constant 1.000000e+00 : f32
    %63 = vector.broadcast %cst_19 : f32 to vector<1x1x128xf32>
    %64 = vector.shape_cast %62 : vector<1x1xf32> to vector<1x1x1xf32>
    %65 = vector.broadcast %64 : vector<1x1x1xf32> to vector<1x1x128xf32>
    %66 = arith.mulf %65, %63 : vector<1x1x128xf32>
    %c0_20 = arith.constant 0 : index
    %c0_21 = arith.constant 0 : index
    %c0_22 = arith.constant 0 : index
    %67 = vector.load %arg3[%c0_20, %c0_21, %c0_22] : memref<1x1x128xf32, #tpu.memory_space<vmem>>, vector<1x1x128xf32>
    tpu.vector_store %arg3[%c0_20, %c0_21, %c0_22], %66 {strides = array<i32>} : memref<1x1x128xf32, #tpu.memory_space<vmem>>, vector<1x1x128xf32>,
    return
  }
  func.func @transform_0(%arg0: i32) -> (i32, i32) {
    %c0_i32 = arith.constant 0 : i32
    %c0_i32_0 = arith.constant 0 : i32
    return %c0_i32, %arg0 : i32, i32
  }
  func.func @transform_1(%arg0: i32) -> (i32, i32) {
    %c0_i32 = arith.constant 0 : i32
    %c0_i32_0 = arith.constant 0 : i32
    return %c0_i32, %arg0 : i32, i32
  }
  func.func @transform_2(%arg0: i32) -> (i32, i32, i32) {
    %c0_i32 = arith.constant 0 : i32
    %c0_i32_0 = arith.constant 0 : i32
    %c0_i32_1 = arith.constant 0 : i32
    return %arg0, %c0_i32, %c0_i32_0 : i32, i32, i32
  }
}

</mosaic_0001>

<bundles_post_ra>
// kernel: tpu_custom_call.1
= control target key start
LH: loop header
LB: loop body
LE: loop exit
PB: predicated region body
PF: predicated region fallthrough
CT: control target
= control target key end

     0   :  { %7 = vsyncpa [#allocation3], 0  ;;  %s353_s0 = inlined_call_operand.hbm [shape: f32[10,16], index: 0, kind: input, shape index: {}]   ;;  %s354_s1 = inlined_call_operand.hbm [shape: s32[1,16], index: 1, kind: input, shape index: {}]   ;;  %s355_s2 = inlined_call_operand.hbm [shape: f32[1,1,128], index: 2, kind: output, shape index: {}]  }
   0x1   :  { %8 = vsyncpa [#allocation6], 0 }
   0x2   :  { %9 = vsyncpa [#allocation4], 0  ;;  %s14_s11 = sshll.u32 %s353_s0, 4  ;;  %s314_s12 = smov [#allocation2]   ;;  %s15_s11 = int_to_ptr.hbm [resolvable:$true] %s14_s11 }
   0x3   :  { %s16_s13 = sshll.u32 %s314_s12, 4  ;;  %s28_s16 = sshll.u32 %s354_s1, 4  ;;  %s17_s13 = int_to_ptr.vmem [resolvable:$true] %s16_s13  ;;  %s29_s16 = int_to_ptr.hbm [resolvable:$true] %s28_s16 }
   0x4   :  { %s315_s17 = smov 128   ;;  %s316_s18 = smov 8  }
   0x5   :  { %22 = dma.hbm_to_vmem [thread:$0]  %s15_s11, 256, %s17_s13, [#allocation3], %s315_s17, %s315_s17, %s316_s18  }
   0x6   :  { %s317_s19 = smov [#allocation5]  }
   0x7   :  { %s30_s20 = sshll.u32 %s317_s19, 4  ;;  %s31_s20 = int_to_ptr.vmem [resolvable:$true] %s30_s20 }
   0x8   :  { %33 = dma.hbm_to_vmem [thread:$0]  %s29_s16, 16, %s31_s20, [#allocation6]  }
   0x9   :  { %308 = dma.done.wait [#allocation3], 256  }
   0xa   :  { %309 = vsyncadd [#allocation3], 4294967040 }
   0xb   :  { %310 = dma.done.wait [#allocation6], 16  }
   0xc   :  { %311 = vsyncadd [#allocation6], 4294967280  ;;  %vm45_vm0 = vcmask 1041408   ;;  %v42_v0 = vld [vmem:[#allocation2] sm:$0xff]  ;;  %v43_v1 = vld [vmem:[#allocation2 + $0x8] sm:$0x3]  ;;  %v128_v23 = vlaneseq }
   0xd   :  { %v46_v2 = vsel %vm45_vm0, %v43_v1, -inf  ;;  %v215_v27 = vld [vmem:[#allocation5] ss:$0 sm:$0xff]  ;;  %s318_s0 = smov [#allocation7]   ;;  %s199_s23 = sshll.u32 %s355_s2, 4  ;;  %s200_s23 = int_to_ptr.hbm [resolvable:$true] %s199_s23 }
   0xe   :  { %v47_v3 = vmax.f32 %v42_v0, %v46_v2  ;;  %v129_v25 = vshrl.u32 %v128_v23, 7  ;;  %s197_s1 = sshll.u32 %s318_s0, 4  ;;  %s198_s1 = int_to_ptr.vmem [resolvable:$true] %s197_s1 }
  0x10   :  { %v48_v4 = vrot.slane %v47_v3, 4  ;;  %v130_v26 = vadd.s32 8, %v129_v25  ;;  %vm132_vm1 = vcmp.eq.s32.totalorder %v129_v25, %v215_v27 }
  0x12   :  { %v49_v5 = vmax.f32 %v47_v3, %v48_v4  ;;  %vm133_vm2 = vcmp.eq.s32.totalorder %v130_v26, %v215_v27 }
  0x14   :  { %v50_v6 = vrot.slane %v49_v5, 2 }
  0x16   :  { %v51_v7 = vmax.f32 %v49_v5, %v50_v6 }
  0x18   :  { %v52_v8 = vrot.slane %v51_v7, 1 }
  0x1a   :  { %v53_v9 = vmax.f32 %v51_v7, %v52_v8 }
  0x1c   :  { %v54_v10 = vsub.f32 %v42_v0, %v53_v9  ;;  %v55_v11 = vsub.f32 %v43_v1, %v53_v9 }
  0x1e   :  { %v56_v12 = vmul.f32 1.442695, %v54_v10  ;;  %v58_v13 = vmul.f32 1.442695, %v55_v11 }
  0x20   :  { %216 = vpow2.f32 %v56_v12 }
  0x21   :  { %218 = vpow2.f32 %v58_v13 }
  0x26   :  { %v217_v14 = vpop.eup %216 }
  0x27   :  { %v219_v15 = vpop.eup %218 }
  0x28   :  { %v60_v16 = vsel %vm45_vm0, %v219_v15, 0.0 }
  0x29   :  { %v61_v17 = vadd.f32 %v217_v14, %v60_v16 }
  0x2b   :  { %v62_v18 = vrot.slane %v61_v17, 4 }
  0x2d   :  { %v63_v19 = vadd.f32 %v62_v18, %v61_v17 }
  0x2f   :  { %v64_v20 = vrot.slane %v63_v19, 2 }
  0x31   :  { %v65_v21 = vadd.f32 %v64_v20, %v63_v19 }
  0x33   :  { %v66_v22 = vrot.slane %v65_v21, 1 }
  0x35   :  { %v67_v24 = vadd.f32 %v66_v22, %v65_v21 }
  0x37   :  { %220 = vrcp.f32 %v67_v24  ;;  %v79_v31 = vand.u32 2147483648, %v67_v24  ;;  %vm73_vm3 = vweird.f32 %v67_v24  ;;  %v77_v34 = vand.u32 2147483647, %v67_v24 }
  0x38   :  { %222 = vlog2.f32 %v67_v24 }
  0x39   :  { %v80_v38 = vor.u32 1.1754944e-38, %v79_v31  ;;  %vm78_vm6 = vcmp.eq.f32.partialorder %v77_v34, 8.507059e+37 }
  0x3d   :  { %v221_v28 = vpop.eup %220 }
  0x3e   :  { %v223_v29 = vpop.eup %222  ;;  %v69_v30 = vmul.f32 %v221_v28, %v67_v24  ;;  %vm74_vm4 = vweird.f32 %v221_v28 }
  0x3f   :  { %v83_v32 = vmul.f32 0.6931472, %v223_v29  ;;  %vm75_vm5 = vmor %vm73_vm3, %vm74_vm4 }
  0x40   :  { %v70_v33 = vsub.f32 1.0, %v69_v30 }
  0x41   :  { %v84_v35 = vsub.f32 %v54_v10, %v83_v32  ;;  %v85_v36 = vsub.f32 %v55_v11, %v83_v32 }
  0x42   :  { %v71_v37 = vmul.f32 %v221_v28, %v70_v33 }
  0x43   :  { %v134_v39 = vsel %vm132_vm1, %v84_v35, 0.0  ;;  %v135_v40 = vsel %vm133_vm2, %v85_v36, 0.0  ;;  %v116_v7 = vsub.f32 0.0, %v84_v35 }
  0x44   :  { %v72_v41 = vadd.f32 %v221_v28, %v71_v37  ;;  %v136_v42 = vsel %vm45_vm0, %v135_v40, 0.0 }
  0x45   :  { %v137_v43 = vadd.f32 %v136_v42, %v134_v39 }
  0x46   :  { %v76_v44 = vsel %vm75_vm5, %v221_v28, %v72_v41 }
  0x47   :  { %v81_v45 = vsel %vm78_vm6, %v80_v38, %v76_v44  ;;  %v138_v46 = vrot.slane %v137_v43, 4 }
  0x48   :  { %v86_v47 = vmul.f32 %v217_v14, %v81_v45  ;;  %v87_v48 = vmul.f32 %v219_v15, %v81_v45  ;;  %v117_v15 = vsub.f32 0.0, %v85_v36 }
  0x49   :  { %v139_v49 = vadd.f32 %v138_v46, %v137_v43 }
  0x4a   :  { %v88_v50 = vsub.f32 1.0, %v86_v47  ;;  %v89_v51 = vsub.f32 1.0, %v87_v48 }
  0x4b   :  { %v140_v52 = vrot.slane %v139_v49, 2 }
  0x4c   :  { %v90_v53 = vmax.f32 %v88_v50, 0.0  ;;  %v91_v54 = vmax.f32 %v89_v51, 0.0 }
  0x4d   :  { %v141_v55 = vadd.f32 %v140_v52, %v139_v49 }
  0x4e   :  { %224 = vrsqrt.f32 %v90_v53  ;;  %vm99_vm7 = vcmp.eq.f32.partialorder %v90_v53, inf  ;;  %vm101_vm8 = vcmp.eq.f32.partialorder %v90_v53, 0.0  ;;  %v102_v9 = vand.u32 2147483648, %v90_v53 }
  0x4f   :  { %226 = vrsqrt.f32 %v91_v54  ;;  %v142_v56 = vrot.slane %v141_v55, 1  ;;  %vm111_vm9 = vcmp.eq.f32.partialorder %v91_v54, inf  ;;  %v114_v12 = vand.u32 2147483648, %v91_v54 }
  0x50   :  { %vm113_vm10 = vcmp.eq.f32.partialorder %v91_v54, 0.0 }
  0x51   :  { %v344_v57 = vadd.f32 %v142_v56, %v141_v55 }
  0x53   :  { %v144_v59 = vmul.f32 1.442695, %v344_v57  ;;  %v160_v45 = vsub.f32 0.0, %v344_v57 }
  0x54   :  { %v225_v58 = vpop.eup %224 }
  0x55   :  { %v227_v60 = vpop.eup %226  ;;  %v93_v61 = vmul.f32 %v225_v58, %v90_v53  ;;  %228 = vpow2.f32 %v144_v59 }
  0x56   :  { %v105_v62 = vmul.f32 %v227_v60, %v91_v54 }
  0x57   :  { %v94_v63 = vmul.f32 %v225_v58, %v93_v61 }
  0x58   :  { %v106_v0 = vmul.f32 %v227_v60, %v105_v62 }
  0x59   :  { %v95_v1 = vmul.f32 0.5, %v94_v63 }
  0x5a   :  { %v107_v2 = vmul.f32 0.5, %v106_v0 }
  0x5b   :  { %v96_v3 = vsub.f32 1.5, %v95_v1  ;;  %v229_v4 = vpop.eup %228 }
  0x5c   :  { %v108_v5 = vsub.f32 1.5, %v107_v2  ;;  %v146_v8 = vsub.f32 1.0, %v229_v4  ;;  %v177_v36 = vsub.f32 0.0, %v229_v4 }
  0x5d   :  { %v97_v6 = vmul.f32 %v225_v58, %v96_v3 }
  0x5e   :  { %v109_v10 = vmul.f32 %v227_v60, %v108_v5  ;;  %v147_v13 = vmax.f32 %v146_v8, 0.0  ;;  %v178_v38 = vmul.f32 0.33333334, %v177_v36 }
  0x5f   :  { %v98_v11 = vmul.f32 %v97_v6, %v90_v53 }
  0x60   :  { %v110_v14 = vmul.f32 %v109_v10, %v91_v54  ;;  %230 = vrsqrt.f32 %v147_v13  ;;  %vm155_vm11 = vcmp.eq.f32.partialorder %v147_v13, inf  ;;  %v158_v41 = vand.u32 2147483648, %v147_v13 }
  0x61   :  { %v100_v16 = vsel %vm99_vm7, %v90_v53, %v98_v11  ;;  %v179_v42 = vmul.f32 1.442695, %v178_v38  ;;  %vm157_vm12 = vcmp.eq.f32.partialorder %v147_v13, 0.0 }
  0x62   :  { %v103_v17 = vsel %vm101_vm8, %v102_v9, %v100_v16  ;;  %v112_v18 = vsel %vm111_vm9, %v91_v54, %v110_v14  ;;  %v184_v54 = vand.u32 127, %v128_v23 }
  0x63   :  { %v115_v19 = vsel %vm113_vm10, %v114_v12, %v112_v18  ;;  %v118_v20 = vmul.f32 %v116_v7, %v103_v17 }
  0x64   :  { %v119_v21 = vmul.f32 %v117_v15, %v115_v19  ;;  %vm187_vm1 = vcmp.lt.s32.totalorder %v184_v54, 16 }
  0x66   :  { %v120_v22 = vsel %vm45_vm0, %v119_v21, 0.0  ;;  %v231_v24 = vpop.eup %230 }
  0x67   :  { %v121_v25 = vadd.f32 %v120_v22, %v118_v20  ;;  %v149_v26 = vmul.f32 %v231_v24, %v147_v13 }
  0x69   :  { %v122_v27 = vrot.slane %v121_v25, 4  ;;  %v150_v28 = vmul.f32 %v231_v24, %v149_v26 }
  0x6b   :  { %v123_v29 = vadd.f32 %v122_v27, %v121_v25  ;;  %v151_v30 = vmul.f32 0.5, %v150_v28 }
  0x6d   :  { %v124_v31 = vrot.slane %v123_v29, 2  ;;  %v152_v33 = vsub.f32 1.5, %v151_v30 }
  0x6f   :  { %v125_v32 = vadd.f32 %v124_v31, %v123_v29  ;;  %v153_v37 = vmul.f32 %v231_v24, %v152_v33 }
  0x71   :  { %v126_v34 = vrot.slane %v125_v32, 1  ;;  %v154_v39 = vmul.f32 %v153_v37, %v147_v13 }
  0x73   :  { %v127_v35 = vadd.f32 %v126_v34, %v125_v32  ;;  %v156_v43 = vsel %vm155_vm11, %v147_v13, %v154_v39 }
  0x74   :  { %v159_v49 = vsel %vm157_vm12, %v158_v41, %v156_v43 }
  0x75   :  { %232 = vrcp.f32 %v127_v35  ;;  %v173_v46 = vand.u32 2147483648, %v127_v35  ;;  %vm167_vm13 = vweird.f32 %v127_v35  ;;  %v171_v48 = vand.u32 2147483647, %v127_v35 }
  0x76   :  { %234 = vpow2.f32 %v179_v42  ;;  %v161_v52 = vmul.f32 %v160_v45, %v159_v49 }
  0x77   :  { %v174_v51 = vor.u32 1.1754944e-38, %v173_v46  ;;  %vm172_vm0 = vcmp.eq.f32.partialorder %v171_v48, 8.507059e+37 }
  0x7b   :  { %v233_v40 = vpop.eup %232 }
  0x7c   :  { %v163_v44 = vmul.f32 %v233_v40, %v127_v35  ;;  %vm168_vm14 = vweird.f32 %v233_v40  ;;  %v235_v56 = vpop.eup %234 }
  0x7d   :  { %vm169_vm15 = vmor %vm167_vm13, %vm168_vm14 }
  0x7e   :  { %v164_v47 = vsub.f32 1.0, %v163_v44 }
  0x80   :  { %v165_v50 = vmul.f32 %v233_v40, %v164_v47 }
  0x82   :  { %v166_v53 = vadd.f32 %v233_v40, %v165_v50 }
  0x84   :  { %v170_v55 = vsel %vm169_vm15, %v233_v40, %v166_v53 }
  0x85   :  { %v175_v58 = vsel %vm172_vm0, %v174_v51, %v170_v55 }
  0x86   :  { %v176_v59 = vmul.f32 %v175_v58, %v161_v52 }
  0x88   :  { %v181_v57 = vadd.f32 %v235_v56, %v176_v59 }
  0x8a   :  { %v188_v60 = vsel %vm187_vm1, %v181_v57, 0.0 }
  0x8b   :  { %189 = vadd.xlane.f32.xlu0 %v188_v60 }
  0xfe   :  { %v190_v61 = vpop.xlane.xlu0 %189 }
  0xff   :  { %191 = vst [vmem:[#allocation7] sm:$0x1] %v190_v61 }
 0x100   :  { %202 = dma.vmem_to_hbm [thread:$0]  %s198_s1, 16, %s200_s23, [#allocation4]  }
 0x101   :  { %312 = dma.done.wait [#allocation4], 16  }
 0x102   :  { %313 = vsyncadd [#allocation4], 4294967280 }
 0x103   :  { %207 = vsyncpa [#allocation3], 1 }
 0x104   :  { %208 = vsyncpa [#allocation6], 1 }
 0x105   :  { %209 = vsyncpa [#allocation4], 1 }

</bundles_post_ra>
